<compile_context>
chip_gen: v7x
topology: tpu7x:2x2x1
jax: 0.10.0
libtpu: 0.0.40
codegen_flags: <defaults>
</compile_context>

<pallas_src>
import functools

import jax
import jax.numpy as jnp
from jax.experimental import pallas as pl
from jax.experimental.pallas import tpu as pltpu


def _round_up(n, m):
    return ((n + m - 1) // m) * m


def _gru_obs_kernel(idx_ref,       # SMEM (num_obs_padded,) int32 (scalar prefetch)
                    h_hbm,         # ANY  (batch_total, hidden) = mgn_h (aliased -> out 0)
                    ht_hbm,        # ANY  (batch_total, hidden) = mgn_h_tilde (alias only)
                    x_ref,         # VMEM (TB, xk) tile of [x_obs | 1 | 0-pad]
                    wb_ref,        # VMEM (xk, 3*hidden) expanded W_r|W_z|W_h + bias row
                    u_ref,         # VMEM (hidden, 3*hidden) block-diag U_r|U_z|U_h
                    out_h_hbm,     # ANY  (batch_total, hidden) output (same buf as h_hbm)
                    out_ht_hbm,    # ANY  (batch_total, hidden) output (same buf as ht_hbm)
                    hbuf,          # VMEM (TB, hidden) scratch: gathered h, then h_new
                    htbuf,         # VMEM (TB, hidden) scratch: h_tilde
                    sem,           # DMA semaphores, shape (2,)
                    *, num_obs):
    del ht_hbm                                   # alias-only, never read in-kernel
    tb, hidden = hbuf.shape
    base = pl.program_id(0) * tb

    # ---- gather the TB observed rows of mgn_h into VMEM (per-row DMAs) ----
    @pl.loop(0, tb)
    def _(r):
        row = idx_ref[base + r]
        pltpu.make_async_copy(h_hbm.at[pl.ds(row, 1), :],
                              hbuf.at[pl.ds(r, 1), :], sem.at[0]).start()

    @pl.loop(0, tb)
    def _(r):
        # Same-sized descriptor; only used to wait for one row's completion.
        pltpu.make_async_copy(h_hbm.at[pl.ds(0, 1), :],
                              hbuf.at[pl.ds(r, 1), :], sem.at[0]).wait()

    # ---- batched GRUCell on the (TB, hidden) tile --------------------------
    h32 = hbuf[...].astype(jnp.float32)          # element-wise math stays f32
    h_mx = hbuf[...].astype(u_ref.dtype)         # MXU LHS in weight dtype
    x = x_ref[...]                               # (TB, xk), weight dtype

    # x*W + b for all three gates in one MXU pass (bias via the 1-column).
    xwb = jnp.dot(x, wb_ref[...], preferred_element_type=jnp.float32)    # (TB, 3H)
    # h @ [U_r | U_z] in one MXU pass.
    rz = jnp.dot(h_mx, u_ref[:, :2 * hidden],
                 preferred_element_type=jnp.float32)                     # (TB, 2H)
    r = jax.nn.sigmoid(xwb[:, :hidden] + rz[:, :hidden])
    z = jax.nn.sigmoid(xwb[:, hidden:2 * hidden] + rz[:, hidden:])
    rh = (r * h32).astype(u_ref.dtype)
    hh = jnp.dot(rh, u_ref[:, 2 * hidden:],
                 preferred_element_type=jnp.float32)                     # (TB, H)
    h_tilde = jnp.tanh(xwb[:, 2 * hidden:] + hh)
    h_new = z * h32 + (1.0 - z) * h_tilde

    hbuf[...] = h_new.astype(hbuf.dtype)         # full (TB, 128) dense stores
    htbuf[...] = h_tilde.astype(htbuf.dtype)

    # ---- scatter the valid rows back into the aliased HBM outputs ----------
    @pl.loop(0, tb)
    def _(r):
        @pl.when(base + r < num_obs)             # skip rows that are padding
        def _():
            row = idx_ref[base + r]
            pltpu.make_async_copy(hbuf.at[pl.ds(r, 1), :],
                                  out_h_hbm.at[pl.ds(row, 1), :], sem.at[1]).start()
            pltpu.make_async_copy(htbuf.at[pl.ds(r, 1), :],
                                  out_ht_hbm.at[pl.ds(row, 1), :], sem.at[1]).start()

    @pl.loop(0, tb)
    def _(r):
        @pl.when(base + r < num_obs)
        def _():
            pltpu.make_async_copy(hbuf.at[pl.ds(r, 1), :],
                                  out_h_hbm.at[pl.ds(0, 1), :], sem.at[1]).wait()
            pltpu.make_async_copy(htbuf.at[pl.ds(r, 1), :],
                                  out_ht_hbm.at[pl.ds(0, 1), :], sem.at[1]).wait()


def fuse_gru_params(params, dtype=jnp.float32):
    """One-time repack of per-slot GRUCell params into fused, MXU-friendly slabs.

    Returns
      wb_exp: (round_up(input_size+1, 8), 3*hidden).  Row i < input_size holds
              W_*[i] in its slot's column block; row `input_size` holds the
              biases; remaining rows are zero.  [x | 1 | 0...] @ wb_exp gives
              x*W + b for the r, z, h~ gates.
      u_cat:  (hidden, 3*hidden) block-diagonal [U_r | U_z | U_h].
    dtype=jnp.bfloat16 halves weight DMA/VMEM and doubles MXU throughput
    (accumulation stays float32 in the kernel).
    """
    u_r, u_z, u_h = params["U_r"], params["U_z"], params["U_h"]
    i, d, _ = u_r.shape
    hidden = i * d
    eye = jnp.eye(i, dtype=jnp.float32)

    def block_diag(u):                            # (I, D, D) -> (I*D, I*D)
        return (eye[:, None, :, None] * u[:, :, None, :]).reshape(hidden, hidden)

    def expand_w(w):                              # (I, 1, D) -> (I, I*D)
        return (eye[:, :, None] * w[:, 0, :][:, None, :]).reshape(i, hidden)

    u_cat = jnp.concatenate(
        [block_diag(u_r), block_diag(u_z), block_diag(u_h)], axis=1)      # (H, 3H)
    w_rows = jnp.concatenate(
        [expand_w(params["W_r"]), expand_w(params["W_z"]),
         expand_w(params["W_h"])], axis=1)                                # (I, 3H)
    b_row = jnp.concatenate(
        [params["b_r"].reshape(1, hidden), params["b_z"].reshape(1, hidden),
         params["b_h"].reshape(1, hidden)], axis=1)                       # (1, 3H)

    xk = _round_up(i + 1, 8)
    wb_exp = jnp.zeros((xk, 3 * hidden), jnp.float32)
    wb_exp = wb_exp.at[:i].set(w_rows).at[i].set(b_row[0])
    return wb_exp.astype(dtype), u_cat.astype(dtype)


def _mgn_gru_obs_impl(mgn_h, mgn_h_tilde, x_obs, i_obs, wb_exp, u_cat,
                      *, row_tile=128):
    """Forward of mgn_GRUODEObsCell (minimal=False) with fused params.

    Only the rows listed in i_obs are read/updated: the gather and scatter run
    inside the Pallas kernel via per-row DMAs driven by the scalar-prefetched
    i_obs, and mgn_h / mgn_h_tilde are aliased to the outputs.  i_obs must
    contain unique indices.  Use the donating entry point for a true in-place
    update.
    """
    _, hidden = mgn_h.shape
    num_obs, input_size = x_obs.shape
    xk = wb_exp.shape[0]
    assert u_cat.shape == (hidden, 3 * hidden)

    tb = min(row_tile, _round_up(num_obs, 8))     # rows per grid step
    num_pad = _round_up(num_obs, tb)
    n_tiles = num_pad // tb

    # Augment x with the constant bias column; pad rows / K to tile sizes.
    x_aug = jnp.zeros((num_pad, xk), wb_exp.dtype)
    x_aug = x_aug.at[:num_obs, :input_size].set(x_obs.astype(wb_exp.dtype))
    x_aug = x_aug.at[:num_obs, input_size].set(1.0)
    idx = jnp.zeros((num_pad,), jnp.int32).at[:num_obs].set(i_obs.astype(jnp.int32))

    kernel = functools.partial(_gru_obs_kernel, num_obs=num_obs)

    grid_spec = pltpu.PrefetchScalarGridSpec(
        num_scalar_prefetch=1,
        grid=(n_tiles,),
        in_specs=[
            pl.BlockSpec(memory_space=pl.ANY),                          # mgn_h (HBM)
            pl.BlockSpec(memory_space=pl.ANY),                          # mgn_h_tilde (HBM)
            pl.BlockSpec((tb, xk), lambda t, idx: (t, 0)),              # x_aug tile
            pl.BlockSpec((xk, 3 * hidden), lambda t, idx: (0, 0)),      # wb_exp (resident)
            pl.BlockSpec((hidden, 3 * hidden), lambda t, idx: (0, 0)),  # u_cat (resident)
        ],
        out_specs=[
            pl.BlockSpec(memory_space=pl.ANY),                          # new mgn_h
            pl.BlockSpec(memory_space=pl.ANY),                          # new mgn_h_tilde
        ],
        scratch_shapes=[
            pltpu.VMEM((tb, hidden), mgn_h.dtype),
            pltpu.VMEM((tb, hidden), mgn_h_tilde.dtype),
            pltpu.SemaphoreType.DMA((2,)),
        ],
    )

    new_h, new_ht = pl.pallas_call(
        kernel,
        grid_spec=grid_spec,
        out_shape=[
            jax.ShapeDtypeStruct(mgn_h.shape, mgn_h.dtype),
            jax.ShapeDtypeStruct(mgn_h_tilde.shape, mgn_h_tilde.dtype),
        ],
        # Flat input indices include the scalar-prefetch arg:
        #   0 = i_obs, 1 = mgn_h, 2 = mgn_h_tilde  ->  alias to outputs 0 / 1.
        input_output_aliases={1: 0, 2: 1},
        compiler_params=pltpu.CompilerParams(
            # "arbitrary": row tiles run sequentially, which keeps the
            # data-dependent scatter well-defined.  With i_obs guaranteed
            # unique this may be flipped to "parallel" (~2x on v7x's 2nd TC).
            dimension_semantics=("arbitrary",)),
    )(idx, mgn_h, mgn_h_tilde, x_aug, wb_exp, u_cat)
    return new_h, new_ht


# Standard entry point (XLA inserts the defensive copy == torch .clone()).
mgn_gru_ode_obs_cell = jax.jit(_mgn_gru_obs_impl, static_argnames=("row_tile",))
# Fast path: donate the state arrays so the aliased update is truly in place.
mgn_gru_ode_obs_cell_donating = jax.jit(
    _mgn_gru_obs_impl, static_argnames=("row_tile",), donate_argnums=(0, 1))


def _reference_jax(mgn_h, mgn_h_tilde, x_obs, i_obs, params, *, input_size, n_dim):
    """Pure-jnp reference mirroring the PyTorch einsum code (verification)."""
    b_obs = x_obs.shape[0]
    h = mgn_h[i_obs].reshape(b_obs, input_size, n_dim)
    xb = x_obs[:, :, None]  # (B, I, 1) == X.unsqueeze(1).permute(0,2,1)
    r = jax.nn.sigmoid(jnp.einsum('bij,ijk->bik', xb, params["W_r"])
                       + jnp.einsum('bij,ijk->bik', h, params["U_r"])
                       + params["b_r"])
    z = jax.nn.sigmoid(jnp.einsum('bij,ijk->bik', xb, params["W_z"])
                       + jnp.einsum('bij,ijk->bik', h, params["U_z"])
                       + params["b_z"])
    h_tilde = jnp.tanh(jnp.einsum('bij,ijk->bik', xb, params["W_h"])
                       + jnp.einsum('bij,ijk->bik', r * h, params["U_h"])
                       + params["b_h"])
    h_new = z * h + (1 - z) * h_tilde
    h_new = h_new.reshape(b_obs, input_size * n_dim)
    h_tilde = h_tilde.reshape(b_obs, input_size * n_dim)
    return (mgn_h.at[i_obs].set(h_new),
            mgn_h_tilde.at[i_obs].set(h_tilde))


if __name__ == "__main__":
    input_size = 4
    n_dim = 32             # hidden = I*D = 128 -> lane-dense flat state
    batch_total = 16
    num_obs = 5

    key = jax.random.PRNGKey(0)
    keys = jax.random.split(key, 12)

    # Synthetic parameters (shapes per GRUCell.__init__).  Biases are zero in
    # the torch init but learnable; use small nonzero values so the folded
    # bias path of the kernel is actually exercised.
    params = {
        "W_r": jax.random.normal(keys[0], (input_size, 1, n_dim), jnp.float32),
        "W_z": jax.random.normal(keys[1], (input_size, 1, n_dim), jnp.float32),
        "W_h": jax.random.normal(keys[2], (input_size, 1, n_dim), jnp.float32),
        "U_r": jax.random.normal(keys[3], (input_size, n_dim, n_dim), jnp.float32) * 0.1,
        "U_z": jax.random.normal(keys[4], (input_size, n_dim, n_dim), jnp.float32) * 0.1,
        "U_h": jax.random.normal(keys[5], (input_size, n_dim, n_dim), jnp.float32) * 0.1,
        "b_r": jax.random.normal(keys[9], (input_size, n_dim), jnp.float32) * 0.1,
        "b_z": jax.random.normal(keys[10], (input_size, n_dim), jnp.float32) * 0.1,
        "b_h": jax.random.normal(keys[11], (input_size, n_dim), jnp.float32) * 0.1,
    }

    mgn_h = jax.random.normal(keys[6], (batch_total, input_size * n_dim), jnp.float32)
    mgn_h_tilde = jax.random.normal(keys[7], (batch_total, input_size * n_dim), jnp.float32)
    x_obs = jax.random.normal(keys[8], (num_obs, input_size), jnp.float32)
    i_obs = jnp.array([1, 4, 6, 9, 14], dtype=jnp.int32)   # unique observed rows

    ref_h, ref_ht = _reference_jax(mgn_h, mgn_h_tilde, x_obs, i_obs, params,
                                   input_size=input_size, n_dim=n_dim)

    # float32 weights: exact check against the reference.
    wb32, u32 = fuse_gru_params(params, dtype=jnp.float32)
    out_h, out_ht = mgn_gru_ode_obs_cell(mgn_h, mgn_h_tilde, x_obs, i_obs, wb32, u32)
    jax.block_until_ready((out_h, out_ht))
    assert jnp.allclose(out_h, ref_h, atol=1e-5, rtol=1e-5)
    assert jnp.allclose(out_ht, ref_ht, atol=1e-5, rtol=1e-5)

    # bfloat16 weights (production setting: half the resident-weight footprint,
    # 2x MXU; f32 accumulation + f32 element-wise math): loose check.
    wb16, u16 = fuse_gru_params(params, dtype=jnp.bfloat16)
    out_h16, out_ht16 = mgn_gru_ode_obs_cell(mgn_h, mgn_h_tilde, x_obs, i_obs, wb16, u16)
    jax.block_until_ready((out_h16, out_ht16))
    assert jnp.allclose(out_h16, ref_h, atol=1e-1, rtol=0.0)
    assert jnp.allclose(out_ht16, ref_ht, atol=1e-1, rtol=0.0)

    print("KERNEL_OK")
</pallas_src>

<mosaic_0001>
module attributes {stable_mosaic.version = 11 : i64} {
  func.func @_gru_obs_kernel(%arg0: i32, %arg1: memref<8xi32, #tpu.memory_space<smem>>, %arg2: memref<16x128xf32, #tpu.memory_space<any>>, %arg3: memref<16x128xf32, #tpu.memory_space<any>>, %arg4: memref<8x8xf32, #tpu.memory_space<vmem>>, %arg5: memref<8x384xf32, #tpu.memory_space<vmem>>, %arg6: memref<128x384xf32, #tpu.memory_space<vmem>>, %arg7: memref<16x128xf32, #tpu.memory_space<any>>, %arg8: memref<16x128xf32, #tpu.memory_space<any>>, %arg9: memref<8x128xf32, #tpu.memory_space<vmem>>, %arg10: memref<8x128xf32, #tpu.memory_space<vmem>>, %arg11: memref<2x!tpu.dma_semaphore, #tpu.memory_space<semaphore_mem>>) attributes {dimension_semantics = [#tpu.dimension_semantics<arbitrary>], iteration_bounds = array<i64: 1>, scalar_prefetch = 1 : i64, scratch_operands = 3 : i64, tpu.core_type = #tpu.core_type<tc>, window_params = [{}, {}, {transform_indices = @transform_2, window_bounds = array<i64: 8, 8>}, {pipeline_mode = #tpu.pipeline_mode<synchronous>, transform_indices = @transform_3, window_bounds = array<i64: 8, 384>}, {pipeline_mode = #tpu.pipeline_mode<synchronous>, transform_indices = @transform_4, window_bounds = array<i64: 128, 384>}, {}, {}]} {
    %c8_i32 = arith.constant 8 : i32
    %0 = arith.muli %arg0, %c8_i32 : i32
    %c0_i32 = arith.constant 0 : i32
    %c8_i32_0 = arith.constant 8 : i32
    %1 = arith.addi %c0_i32, %c8_i32_0 : i32
    %c1_i32 = arith.constant 1 : i32
    scf.for %arg12 = %c0_i32 to %1 step %c1_i32  : i32 {
      %c1_i32_33 = arith.constant 1 : i32
      %41 = arith.muli %arg12, %c1_i32_33 : i32
      %c0_i32_34 = arith.constant 0 : i32
      %42 = arith.addi %c0_i32_34, %41 : i32
      %43 = arith.addi %0, %42 : i32
      %44 = arith.index_cast %43 : i32 to index
      %45 = memref.load %arg1[%44] : memref<8xi32, #tpu.memory_space<smem>>
      %c0_i32_35 = arith.constant 0 : i32
      %c0_i32_36 = arith.constant 0 : i32
      %46 = tpu.memref_slice %arg2[%45, %c0_i32_36] : memref<16x128xf32, #tpu.memory_space<any>> -> memref<1x128xf32, #tpu.memory_space<any>>
      %c0_i32_37 = arith.constant 0 : i32
      %47 = tpu.memref_slice %arg9[%42, %c0_i32_37] : memref<8x128xf32, #tpu.memory_space<vmem>> -> memref<1x128xf32, #tpu.memory_space<vmem>>
      %48 = tpu.memref_slice %arg11[%c0_i32_35] : memref<2x!tpu.dma_semaphore, #tpu.memory_space<semaphore_mem>> -> memref<1x!tpu.dma_semaphore, #tpu.memory_space<semaphore_mem>>
      %49 = tpu.memref_squeeze %48 : memref<1x!tpu.dma_semaphore, #tpu.memory_space<semaphore_mem>> -> memref<!tpu.dma_semaphore, #tpu.memory_space<semaphore_mem>>
      tpu.enqueue_dma source(%46 : memref<1x128xf32, #tpu.memory_space<any>>) target(%47 : memref<1x128xf32, #tpu.memory_space<vmem>>) target_semaphore(%49 : memref<!tpu.dma_semaphore, #tpu.memory_space<semaphore_mem>>)
    }
    %c8_i32_1 = arith.constant 8 : i32
    %c0_i32_2 = arith.constant 0 : i32
    %c8_i32_3 = arith.constant 8 : i32
    %2 = arith.addi %c0_i32_2, %c8_i32_3 : i32
    %c1_i32_4 = arith.constant 1 : i32
    scf.for %arg12 = %c0_i32_2 to %2 step %c1_i32_4  : i32 {
      %c1_i32_33 = arith.constant 1 : i32
      %41 = arith.muli %arg12, %c1_i32_33 : i32
      %c0_i32_34 = arith.constant 0 : i32
      %42 = arith.addi %c0_i32_34, %41 : i32
      %c0_i32_35 = arith.constant 0 : i32
      %c0_i32_36 = arith.constant 0 : i32
      %c0_i32_37 = arith.constant 0 : i32
      %43 = tpu.memref_slice %arg2[%c0_i32_36, %c0_i32_37] : memref<16x128xf32, #tpu.memory_space<any>> -> memref<1x128xf32, #tpu.memory_space<any>>
      %c0_i32_38 = arith.constant 0 : i32
      %44 = tpu.memref_slice %arg9[%42, %c0_i32_38] : memref<8x128xf32, #tpu.memory_space<vmem>> -> memref<1x128xf32, #tpu.memory_space<vmem>>
      %45 = tpu.memref_slice %arg11[%c0_i32_35] : memref<2x!tpu.dma_semaphore, #tpu.memory_space<semaphore_mem>> -> memref<1x!tpu.dma_semaphore, #tpu.memory_space<semaphore_mem>>
      %46 = tpu.memref_squeeze %45 : memref<1x!tpu.dma_semaphore, #tpu.memory_space<semaphore_mem>> -> memref<!tpu.dma_semaphore, #tpu.memory_space<semaphore_mem>>
      tpu.wait_dma2 semaphore(%46 : memref<!tpu.dma_semaphore, #tpu.memory_space<semaphore_mem>>) src(%43 : memref<1x128xf32, #tpu.memory_space<any>>) dst(%44 : memref<1x128xf32, #tpu.memory_space<vmem>>)
    }
    %c8_i32_5 = arith.constant 8 : i32
    %c0 = arith.constant 0 : index
    %c0_6 = arith.constant 0 : index
    %3 = vector.load %arg9[%c0, %c0_6] : memref<8x128xf32, #tpu.memory_space<vmem>>, vector<8x128xf32>
    %c0_7 = arith.constant 0 : index
    %c0_8 = arith.constant 0 : index
    %4 = vector.load %arg9[%c0_7, %c0_8] : memref<8x128xf32, #tpu.memory_space<vmem>>, vector<8x128xf32>
    %c0_9 = arith.constant 0 : index
    %c0_10 = arith.constant 0 : index
    %5 = vector.load %arg4[%c0_9, %c0_10] : memref<8x8xf32, #tpu.memory_space<vmem>>, vector<8x8xf32>
    %c0_11 = arith.constant 0 : index
    %c0_12 = arith.constant 0 : index
    %6 = vector.load %arg5[%c0_11, %c0_12] : memref<8x384xf32, #tpu.memory_space<vmem>>, vector<8x384xf32>
    %cst = arith.constant dense<0.000000e+00> : vector<8x384xf32>
    %7 = tpu.matmul %5, %6, %cst {dimension_numbers = #tpu.dot_dimension_numbers<[1], [0], [0], [1], [0, 0, 1, 1], [], []>} : vector<8x8xf32>, vector<8x384xf32>, vector<8x384xf32> -> vector<8x384xf32>
    %c0_13 = arith.constant 0 : index
    %c0_14 = arith.constant 0 : index
    %8 = vector.load %arg6[%c0_13, %c0_14] : memref<128x384xf32, #tpu.memory_space<vmem>>, vector<128x256xf32>
    %cst_15 = arith.constant dense<0.000000e+00> : vector<8x256xf32>
    %9 = tpu.matmul %4, %8, %cst_15 {dimension_numbers = #tpu.dot_dimension_numbers<[1], [0], [0], [1], [0, 0, 1, 1], [], []>} : vector<8x128xf32>, vector<128x256xf32>, vector<8x256xf32> -> vector<8x256xf32>
    %10 = vector.extract_strided_slice %7 {offsets = [0, 0], sizes = [8, 128], strides = [1, 1]} : vector<8x384xf32> to vector<8x128xf32>
    %11 = vector.extract_strided_slice %9 {offsets = [0, 0], sizes = [8, 128], strides = [1, 1]} : vector<8x256xf32> to vector<8x128xf32>
    %12 = arith.addf %10, %11 : vector<8x128xf32>
    %13 = arith.negf %12 : vector<8x128xf32>
    %14 = math.exp %13 : vector<8x128xf32>
    %cst_16 = arith.constant 1.000000e+00 : f32
    %15 = vector.broadcast %cst_16 : f32 to vector<8x128xf32>
    %16 = arith.addf %15, %14 : vector<8x128xf32>
    %17 = arith.divf %15, %16 : vector<8x128xf32>
    %18 = vector.extract_strided_slice %7 {offsets = [0, 128], sizes = [8, 128], strides = [1, 1]} : vector<8x384xf32> to vector<8x128xf32>
    %19 = vector.extract_strided_slice %9 {offsets = [0, 128], sizes = [8, 128], strides = [1, 1]} : vector<8x256xf32> to vector<8x128xf32>
    %20 = arith.addf %18, %19 : vector<8x128xf32>
    %21 = arith.negf %20 : vector<8x128xf32>
    %22 = math.exp %21 : vector<8x128xf32>
    %cst_17 = arith.constant 1.000000e+00 : f32
    %23 = vector.broadcast %cst_17 : f32 to vector<8x128xf32>
    %24 = arith.addf %23, %22 : vector<8x128xf32>
    %25 = arith.divf %23, %24 : vector<8x128xf32>
    %26 = arith.mulf %17, %3 : vector<8x128xf32>
    %c0_18 = arith.constant 0 : index
    %c256 = arith.constant 256 : index
    %27 = vector.load %arg6[%c0_18, %c256] : memref<128x384xf32, #tpu.memory_space<vmem>>, vector<128x128xf32>
    %cst_19 = arith.constant dense<0.000000e+00> : vector<8x128xf32>
    %28 = tpu.matmul %26, %27, %cst_19 {dimension_numbers = #tpu.dot_dimension_numbers<[1], [0], [0], [1], [0, 0, 1, 1], [], []>} : vector<8x128xf32>, vector<128x128xf32>, vector<8x128xf32> -> vector<8x128xf32>
    %29 = vector.extract_strided_slice %7 {offsets = [0, 256], sizes = [8, 128], strides = [1, 1]} : vector<8x384xf32> to vector<8x128xf32>
    %30 = arith.addf %29, %28 : vector<8x128xf32>
    %31 = math.tanh %30 : vector<8x128xf32>
    %32 = arith.mulf %25, %3 : vector<8x128xf32>
    %cst_20 = arith.constant 1.000000e+00 : f32
    %33 = vector.broadcast %cst_20 : f32 to vector<8x128xf32>
    %34 = arith.subf %33, %25 : vector<8x128xf32>
    %35 = arith.mulf %34, %31 : vector<8x128xf32>
    %36 = arith.addf %32, %35 : vector<8x128xf32>
    %c0_21 = arith.constant 0 : index
    %c0_22 = arith.constant 0 : index
    %37 = vector.load %arg9[%c0_21, %c0_22] : memref<8x128xf32, #tpu.memory_space<vmem>>, vector<8x128xf32>
    tpu.vector_store %arg9[%c0_21, %c0_22], %36 {strides = array<i32>} : memref<8x128xf32, #tpu.memory_space<vmem>>, vector<8x128xf32>,
    %c0_23 = arith.constant 0 : index
    %c0_24 = arith.constant 0 : index
    %38 = vector.load %arg10[%c0_23, %c0_24] : memref<8x128xf32, #tpu.memory_space<vmem>>, vector<8x128xf32>
    tpu.vector_store %arg10[%c0_23, %c0_24], %31 {strides = array<i32>} : memref<8x128xf32, #tpu.memory_space<vmem>>, vector<8x128xf32>,
    %c0_i32_25 = arith.constant 0 : i32
    %c8_i32_26 = arith.constant 8 : i32
    %39 = arith.addi %c0_i32_25, %c8_i32_26 : i32
    %c1_i32_27 = arith.constant 1 : i32
    scf.for %arg12 = %c0_i32_25 to %39 step %c1_i32_27  : i32 {
      %c1_i32_33 = arith.constant 1 : i32
      %41 = arith.muli %arg12, %c1_i32_33 : i32
      %c0_i32_34 = arith.constant 0 : i32
      %42 = arith.addi %c0_i32_34, %41 : i32
      %43 = arith.addi %0, %42 : i32
      %c5_i32 = arith.constant 5 : i32
      %44 = arith.cmpi slt, %43, %c5_i32 : i32
      %45 = arith.extui %44 : i1 to i32
      %c0_i32_35 = arith.constant 0 : i32
      %46 = arith.cmpi ne, %45, %c0_i32_35 : i32
      scf.if %46 {
        %47 = arith.addi %0, %42 : i32
        %48 = arith.index_cast %47 : i32 to index
        %49 = memref.load %arg1[%48] : memref<8xi32, #tpu.memory_space<smem>>
        %c1_i32_36 = arith.constant 1 : i32
        %c0_i32_37 = arith.constant 0 : i32
        %50 = tpu.memref_slice %arg9[%42, %c0_i32_37] : memref<8x128xf32, #tpu.memory_space<vmem>> -> memref<1x128xf32, #tpu.memory_space<vmem>>
        %c0_i32_38 = arith.constant 0 : i32
        %51 = tpu.memref_slice %arg7[%49, %c0_i32_38] : memref<16x128xf32, #tpu.memory_space<any>> -> memref<1x128xf32, #tpu.memory_space<any>>
        %52 = tpu.memref_slice %arg11[%c1_i32_36] : memref<2x!tpu.dma_semaphore, #tpu.memory_space<semaphore_mem>> -> memref<1x!tpu.dma_semaphore, #tpu.memory_space<semaphore_mem>>
        %53 = tpu.memref_squeeze %52 : memref<1x!tpu.dma_semaphore, #tpu.memory_space<semaphore_mem>> -> memref<!tpu.dma_semaphore, #tpu.memory_space<semaphore_mem>>
        tpu.enqueue_dma source(%50 : memref<1x128xf32, #tpu.memory_space<vmem>>) target(%51 : memref<1x128xf32, #tpu.memory_space<any>>) target_semaphore(%53 : memref<!tpu.dma_semaphore, #tpu.memory_space<semaphore_mem>>)
        %c1_i32_39 = arith.constant 1 : i32
        %c0_i32_40 = arith.constant 0 : i32
        %54 = tpu.memref_slice %arg10[%42, %c0_i32_40] : memref<8x128xf32, #tpu.memory_space<vmem>> -> memref<1x128xf32, #tpu.memory_space<vmem>>
        %c0_i32_41 = arith.constant 0 : i32
        %55 = tpu.memref_slice %arg8[%49, %c0_i32_41] : memref<16x128xf32, #tpu.memory_space<any>> -> memref<1x128xf32, #tpu.memory_space<any>>
        %56 = tpu.memref_slice %arg11[%c1_i32_39] : memref<2x!tpu.dma_semaphore, #tpu.memory_space<semaphore_mem>> -> memref<1x!tpu.dma_semaphore, #tpu.memory_space<semaphore_mem>>
        %57 = tpu.memref_squeeze %56 : memref<1x!tpu.dma_semaphore, #tpu.memory_space<semaphore_mem>> -> memref<!tpu.dma_semaphore, #tpu.memory_space<semaphore_mem>>
        tpu.enqueue_dma source(%54 : memref<1x128xf32, #tpu.memory_space<vmem>>) target(%55 : memref<1x128xf32, #tpu.memory_space<any>>) target_semaphore(%57 : memref<!tpu.dma_semaphore, #tpu.memory_space<semaphore_mem>>)
      } else {
      }
    }
    %c8_i32_28 = arith.constant 8 : i32
    %c0_i32_29 = arith.constant 0 : i32
    %c8_i32_30 = arith.constant 8 : i32
    %40 = arith.addi %c0_i32_29, %c8_i32_30 : i32
    %c1_i32_31 = arith.constant 1 : i32
    scf.for %arg12 = %c0_i32_29 to %40 step %c1_i32_31  : i32 {
      %c1_i32_33 = arith.constant 1 : i32
      %41 = arith.muli %arg12, %c1_i32_33 : i32
      %c0_i32_34 = arith.constant 0 : i32
      %42 = arith.addi %c0_i32_34, %41 : i32
      %43 = arith.addi %0, %42 : i32
      %c5_i32 = arith.constant 5 : i32
      %44 = arith.cmpi slt, %43, %c5_i32 : i32
      %45 = arith.extui %44 : i1 to i32
      %c0_i32_35 = arith.constant 0 : i32
      %46 = arith.cmpi ne, %45, %c0_i32_35 : i32
      scf.if %46 {
        %c1_i32_36 = arith.constant 1 : i32
        %c0_i32_37 = arith.constant 0 : i32
        %47 = tpu.memref_slice %arg9[%42, %c0_i32_37] : memref<8x128xf32, #tpu.memory_space<vmem>> -> memref<1x128xf32, #tpu.memory_space<vmem>>
        %c0_i32_38 = arith.constant 0 : i32
        %c0_i32_39 = arith.constant 0 : i32
        %48 = tpu.memref_slice %arg7[%c0_i32_38, %c0_i32_39] : memref<16x128xf32, #tpu.memory_space<any>> -> memref<1x128xf32, #tpu.memory_space<any>>
        %49 = tpu.memref_slice %arg11[%c1_i32_36] : memref<2x!tpu.dma_semaphore, #tpu.memory_space<semaphore_mem>> -> memref<1x!tpu.dma_semaphore, #tpu.memory_space<semaphore_mem>>
        %50 = tpu.memref_squeeze %49 : memref<1x!tpu.dma_semaphore, #tpu.memory_space<semaphore_mem>> -> memref<!tpu.dma_semaphore, #tpu.memory_space<semaphore_mem>>
        tpu.wait_dma2 semaphore(%50 : memref<!tpu.dma_semaphore, #tpu.memory_space<semaphore_mem>>) src(%47 : memref<1x128xf32, #tpu.memory_space<vmem>>) dst(%48 : memref<1x128xf32, #tpu.memory_space<any>>)
        %c1_i32_40 = arith.constant 1 : i32
        %c0_i32_41 = arith.constant 0 : i32
        %51 = tpu.memref_slice %arg10[%42, %c0_i32_41] : memref<8x128xf32, #tpu.memory_space<vmem>> -> memref<1x128xf32, #tpu.memory_space<vmem>>
        %c0_i32_42 = arith.constant 0 : i32
        %c0_i32_43 = arith.constant 0 : i32
        %52 = tpu.memref_slice %arg8[%c0_i32_42, %c0_i32_43] : memref<16x128xf32, #tpu.memory_space<any>> -> memref<1x128xf32, #tpu.memory_space<any>>
        %53 = tpu.memref_slice %arg11[%c1_i32_40] : memref<2x!tpu.dma_semaphore, #tpu.memory_space<semaphore_mem>> -> memref<1x!tpu.dma_semaphore, #tpu.memory_space<semaphore_mem>>
        %54 = tpu.memref_squeeze %53 : memref<1x!tpu.dma_semaphore, #tpu.memory_space<semaphore_mem>> -> memref<!tpu.dma_semaphore, #tpu.memory_space<semaphore_mem>>
        tpu.wait_dma2 semaphore(%54 : memref<!tpu.dma_semaphore, #tpu.memory_space<semaphore_mem>>) src(%51 : memref<1x128xf32, #tpu.memory_space<vmem>>) dst(%52 : memref<1x128xf32, #tpu.memory_space<any>>)
      } else {
      }
    }
    %c8_i32_32 = arith.constant 8 : i32
    return
  }
  func.func @transform_2(%arg0: i32, %arg1: memref<8xi32, #tpu.memory_space<smem>>) -> (i32, i32) {
    %c0_i32 = arith.constant 0 : i32
    %c0_i32_0 = arith.constant 0 : i32
    return %arg0, %c0_i32 : i32, i32
  }
  func.func @transform_3(%arg0: i32, %arg1: memref<8xi32, #tpu.memory_space<smem>>) -> (i32, i32) {
    %c0_i32 = arith.constant 0 : i32
    %c0_i32_0 = arith.constant 0 : i32
    %c0_i32_1 = arith.constant 0 : i32
    return %c0_i32, %c0_i32_0 : i32, i32
  }
  func.func @transform_4(%arg0: i32, %arg1: memref<8xi32, #tpu.memory_space<smem>>) -> (i32, i32) {
    %c0_i32 = arith.constant 0 : i32
    %c0_i32_0 = arith.constant 0 : i32
    %c0_i32_1 = arith.constant 0 : i32
    return %c0_i32, %c0_i32_0 : i32, i32
  }
}

</mosaic_0001>

<bundles_post_ra>
// kernel: _mgn_gru_obs_impl.1
= control target key start
LH: loop header
LB: loop body
LE: loop exit
PB: predicated region body
PF: predicated region fallthrough
CT: control target
= control target key end

     0   :  { %s1053_s0 = inlined_call_operand.vmem [shape: s32[8], index: 0, kind: input, shape index: {}]   ;;  %s1054_s1 = inlined_call_operand.hbm [shape: f32[16,128], index: 1, kind: input, shape index: {}, may-alias: {1,6}]   ;;  %s1055_s2 = inlined_call_operand.hbm [shape: f32[16,128], index: 2, kind: input, shape index: {}, may-alias: {2,7}]   ;;  %s1056_s3 = inlined_call_operand.vmem [shape: f32[8,8], index: 3, kind: input, shape index: {}]   ;;  %s1057_s4 = inlined_call_operand.vmem [shape: f32[8,384], index: 4, kind: input, shape index: {}]   ;;  %s1058_s5 = inlined_call_operand.hbm [shape: f32[128,384], index: 5, kind: input, shape index: {}]   ;;  %s1059_s6 = inlined_call_operand.hbm [shape: f32[16,128], index: 6, kind: output, shape index: {0}, may-alias: {1,6}]   ;;  %s1060_s7 = inlined_call_operand.hbm [shape: f32[16,128], index: 7, kind: output, shape index: {1}, may-alias: {2,7}]  }
   0x1   :  { %s13_s26 = sshll.u32 %s1053_s0, 4  ;;  %s14_s26 = int_to_ptr.vmem [resolvable:$true] %s13_s26 }
   0x2   :  { %s722_s2 = scalar_lea.vmem %s14_s26, 16  ;;  %p727_p1 = scmp.lt.s32.totalorder %s14_s26, %s14_s26 }
   0x3   :  { %p723_p0 = scmp.ne.s32.totalorder %s14_s26, %s722_s2  ;;  %p728_p2 = scmp.lt.s32.totalorder %s722_s2, %s722_s2 }
   0x5   :  { %p729_p3 = por %p728_p2, %p727_p1 }
   0x7   :  { %p730_p4 = pnand %p729_p3, %p723_p0 }
   0x9   :  { %733 = shalt.err (!%p730_p4)  }
   0xa   :  { %s878_s27 = smov [#allocation6]  }
   0xb   :  { %16 = dma.vmem_to_smem %s14_s26, 16, %s878_s27, [#allocation5] }
   0xc   :  { %852 = dma.done.wait [#allocation5], 16 }
   0xd   :  { %853 = vsyncadd [#allocation5], 4294967280 }
   0xe   :  { %18 = sfence }
   0xf   :  { %19 = vsyncpa [#allocation8], 0  ;;  %s879_s28 = smov [#allocation7]   ;;  %s734_s0 = scalar_lea.hbm %s1058_s5, 6144 }
  0x10   :  { %s29_s29 = sshll.u32 %s879_s28, 4  ;;  %p735_p5 = scmp.ne.s32.totalorder %s1058_s5, %s734_s0  ;;  %s30_s29 = int_to_ptr.vmem [resolvable:$true] %s29_s29 }
  0x11   :  { %p738_p6 = scmp.lt.u32.totalorder %s734_s0, %s1058_s5 }
  0x13   :  { %p740_p7 = pnand %p738_p6, %p735_p5 }
  0x15   :  { %743 = shalt.err (!%p740_p7)
}
  0x16   :  { %s744_s13 = scalar_lea.vmem %s30_s29, 6144  ;;  %p749_p9 = scmp.lt.s32.totalorder %s30_s29, %s30_s29 }
  0x17   :  { %p745_p8 = scmp.ne.s32.totalorder %s30_s29, %s744_s13  ;;  %p750_p10 = scmp.lt.s32.totalorder %s744_s13, %s744_s13 }
  0x19   :  { %p751_p11 = por %p750_p10, %p749_p9 }
  0x1b   :  { %p752_p12 = pnand %p751_p11, %p745_p8 }
  0x1d   :  { %755 = shalt.err (!%p752_p12)
}
  0x1e   :  { %s880_s14 = smov 384   ;;  %s881_s15 = smov 24  }
  0x1f   :  { %35 = dma.hbm_to_vmem [thread:$0]  %s1058_s5, 6144, %s30_s29, [#allocation8], %s880_s14, %s880_s14, %s881_s15  }
  0x20   :  { %854 = dma.done.wait [#allocation8], 6144  }
  0x21   :  { %855 = vsyncadd [#allocation8], 4294961152  ;;  %s942_s18 = smov 0  }
  0x22 LB: > { %s47_s19 = sld [smem:[#allocation6 + %s864_s18]]  ;;  %s50_s20 = scalar_lea.vmem [#allocation2], %s864_s18  ;;  %s864_s18 = sphi %s942_s18, %s45_s18  }
  0x23   : > { %s58_s21 = sshll.u32 %s50_s20, 4  ;;  %s758_s27 = scalar_lea.hbm %s1054_s1, 256  ;;  %s59_s21 = int_to_ptr.vmem [resolvable:$true] %s58_s21 }
  0x28   : > { %s534_s22 = sshll.u32 %s47_s19, 4 }
  0x29   : > { %s49_s5 = scalar_lea.hbm %s1054_s1, %s534_s22 }
  0x2a   : > { %s756_s25 = scalar_lea.hbm %s49_s5, 16  ;;  %p759_p0 = scmp.lt.u32.totalorder %s49_s5, %s1054_s1 }
  0x2b   : > { %p757_p13 = scmp.ne.s32.totalorder %s49_s5, %s756_s25  ;;  %p760_p1 = scmp.lt.u32.totalorder %s758_s27, %s756_s25 }
  0x2c   : > { %p762_p3 = scmp.lt.u32.totalorder %s756_s25, %s49_s5 }
  0x2d   : > { %p761_p2 = por %p760_p1, %p759_p0 }
  0x2f   : > { %p763_p4 = por %p762_p3, %p761_p2 }
  0x31   : > { %p764_p5 = pnand %p763_p4, %p757_p13 }
  0x33   : > { %767 = shalt.err (!%p764_p5)  }
  0x34   : > { %s768_s30 = scalar_lea.vmem %s59_s21, 16  ;;  %s882_s8 = smov [#allocation2]  }
  0x35   : > { %p769_p6 = scmp.ne.s32.totalorder %s59_s21, %s768_s30  ;;  %s770_s0 = sshll.u32 %s882_s8, 4  ;;  %s958_s0 = int_to_ptr.vmem [resolvable:$false] %s770_s0 }
  0x36   : > { %s772_s9 = scalar_lea.vmem %s958_s0, 128  ;;  %p773_p7 = scmp.lt.s32.totalorder %s59_s21, %s958_s0 }
  0x37   : > { %p774_p8 = scmp.lt.s32.totalorder %s772_s9, %s768_s30 }
  0x39   : > { %p775_p9 = por %p774_p8, %p773_p7 }
  0x3b   : > { %p776_p10 = pnand %p775_p9, %p769_p6 }
  0x3d   : > { %779 = shalt.err (!%p776_p10)  }
  0x3e   : > { %61 = dma.hbm_to_vmem [thread:$0]  %s49_s5, 16, %s59_s21, [#allocation4] }
  0x3f   : > { %s45_s18 = sadd.s32 1, %s864_s18  }
  0x40   : > { %p42_p11 = scmp.ge.s32.totalorder %s45_s18, 8  }
  0x41   :  { %s866_s10 = smov (%p42_p11), 0  }
  0x42   :  { %44 = sbr.rel (!%p42_p11) target bundleno = 34 (0x22), region = 85 }
  0x49 LB: > { %856 = dma.done.wait [#allocation4], 16  ;;  %s868_s10 = sphi %s866_s10, %s67_s10  }
  0x4a   : > { %857 = vsyncadd [#allocation4], 4294967280  ;;  %s67_s10 = sadd.s32 1, %s868_s10  }
  0x4b   : > { %p64_p12 = scmp.ge.s32.totalorder %s67_s10, 8  }
  0x4c   :  { %v74_v0 = vld [vmem:[%s1057_s4 + $0x8] sm:$0xff] (%p64_p12)  ;;  %v73_v1 = vld [vmem:[%s1057_s4] sm:$0xff] (%p64_p12)  ;;  %v222_v2 = vld [vmem:[#allocation7 + $0x8] sm:$0xff] (%p64_p12)  ;;  %vm76_vm0 = vcmask (%p64_p12), 64512   ;;  %v883_v3 = vmov (%p64_p12), 0.0   ;;  %vm884_vm1 = vmmov (%p64_p12), 0  }
  0x4d   :  { %66 = sbr.rel (!%p64_p12) target bundleno = 73 (0x49), region = 96  ;;  %80 = vmatprep.subr.mxu0 (%p64_p12), %v74_v0  ;;  %144 = vmatprep.mubr.f32.mxu0 (%p64_p12), %v883_v3  ;;  %v224_v4 = vld [vmem:[#allocation7 + $0x20] sm:$0xff] (%p64_p12)  ;;  %v72_v5 = vld [vmem:[%s1056_s3] sm:$0xff] (%p64_p12)  ;;  %v223_v8 = vld [vmem:[#allocation7 + $0x18] sm:$0xff] (%p64_p12)  ;;  %v885_v37 = vmov (%p64_p12), 0.0|0.0  }
  0x4e   :  { %v221_v6 = vld [vmem:[#allocation7] sm:$0xff] (%p64_p12)  ;;  %81 = vmatpush1.msra.mxu0 (%p64_p12), %v73_v1  ;;  %v604_v7 = vpack.c.bf16 (%p64_p12), %v224_v4, %v222_v2  ;;  %v226_v9 = vld [vmem:[#allocation7 + $0x38] sm:$0xff] (%p64_p12)  ;;  %v228_v10 = vld [vmem:[#allocation7 + $0x50] sm:$0xff] (%p64_p12)  ;;  %564 = vmatprep.subr.mxu1 (%p64_p12), %v883_v3 }
  0x4f   :  { %535 = vmatmul.mubr.msk.f32.vlgmr.msra.gmra.mrb[0].mxu0 (%p64_p12), %vm76_vm0, %v72_v5  ;;  %v606_v11 = vpack.c.bf16 (%p64_p12), %v223_v8, %v221_v6  ;;  %v608_v12 = vpack.c.bf16 (%p64_p12), %v228_v10, %v226_v9  ;;  %v225_v13 = vld [vmem:[#allocation7 + $0x30] sm:$0xff] (%p64_p12)  ;;  %v227_v14 = vld [vmem:[#allocation7 + $0x48] sm:$0xff] (%p64_p12)  ;;  %566 = vmatprep.mubr.msk.f32.mxu1 (%p64_p12), %vm884_vm1, %v883_v3  ;;  %v232_v16 = vld [vmem:[#allocation7 + $0x80] sm:$0xff] (%p64_p12) }
  0x50   :  { %v230_v15 = vld [vmem:[#allocation7 + $0x68] sm:$0xff] (%p64_p12)  ;;  %605 = vmatprep.subr.bf16.mxu0 (%p64_p12), %v604_v7  ;;  %317 = vmatprep.mubr.f32.mxu0 (%p64_p12), %v883_v3  ;;  %v610_v17 = vpack.c.bf16 (%p64_p12), %v227_v14, %v225_v13  ;;  %v229_v19 = vld [vmem:[#allocation7 + $0x60] sm:$0xff] (%p64_p12)  ;;  %v231_v20 = vld [vmem:[#allocation7 + $0x78] sm:$0xff] (%p64_p12) }
  0x51   :  { %607 = vmatpush1.bf16.msra.mxu0 (%p64_p12), %v606_v11  ;;  %v612_v18 = vpack.c.bf16 (%p64_p12), %v232_v16, %v230_v15  ;;  %v234_v21 = vld [vmem:[#allocation7 + $0x98] sm:$0xff] (%p64_p12)  ;;  %v236_v22 = vld [vmem:[#allocation7 + $0xb0] sm:$0xff] (%p64_p12)  ;;  %v614_v23 = vpack.c.bf16 (%p64_p12), %v231_v20, %v229_v19  ;;  %v235_v26 = vld [vmem:[#allocation7 + $0xa8] sm:$0xff] (%p64_p12) }
  0x52   :  { %609 = vmatprep.subr.bf16.mxu0 (%p64_p12), %v608_v12  ;;  %v616_v24 = vpack.c.bf16 (%p64_p12), %v236_v22, %v234_v21  ;;  %v233_v25 = vld [vmem:[#allocation7 + $0x90] sm:$0xff] (%p64_p12)  ;;  %v238_v27 = vld [vmem:[#allocation7 + $0xc8] sm:$0xff] (%p64_p12)  ;;  %v240_v28 = vld [vmem:[#allocation7 + $0xe0] sm:$0xff] (%p64_p12) }
  0x53   :  { %v75_v29 = vld [vmem:[%s1057_s4 + $0x10] sm:$0xff] (%p64_p12)  ;;  %v339_v30 = vld [vmem:[#allocation7 + $0x10] sm:$0xff] (%p64_p12)  ;;  %v340_v31 = vld [vmem:[#allocation7 + $0x28] sm:$0xff] (%p64_p12)  ;;  %v618_v32 = vpack.c.bf16 (%p64_p12), %v235_v26, %v233_v25  ;;  %v620_v34 = vpack.c.bf16 (%p64_p12), %v240_v28, %v238_v27  ;;  %s991_s4 = smov (%p64_p12), 0  }
  0x54   :  { %565 = vmatpush3.msra.mxu1 %v75_v29  ;;  %v637_v33 = vpack.c.bf16 %v340_v31, %v339_v30  ;;  %v237_v35 = vld [vmem:[#allocation7 + $0xc0] sm:$0xff]  ;;  %v239_v36 = vld [vmem:[#allocation7 + $0xd8] sm:$0xff]  ;;  %v244_v39 = vld [vmem:[#allocation7 + $0x110] sm:$0xff] }
  0x55   :  { %611 = vmatpush1.bf16.msra.mxu0 %v610_v17  ;;  %636 = vmatprep.subr.bf16.mxu1 %v885_v37  ;;  %v242_v38 = vld [vmem:[#allocation7 + $0xf8] sm:$0xff]  ;;  %v622_v40 = vpack.c.bf16 %v239_v36, %v237_v35  ;;  %v241_v42 = vld [vmem:[#allocation7 + $0xf0] sm:$0xff]  ;;  %v243_v43 = vld [vmem:[#allocation7 + $0x108] sm:$0xff] }
  0x56   :  { %613 = vmatprep.subr.bf16.mxu0 %v612_v18  ;;  %567 = vmatmul.mubr.msk.f32.vlgmr.msra.gmra.mrb[0].mxu1 %vm76_vm0, %v72_v5  ;;  %v624_v41 = vpack.c.bf16 %v244_v39, %v242_v38  ;;  %v246_v44 = vld [vmem:[#allocation7 + $0x128] sm:$0xff]  ;;  %v248_v45 = vld [vmem:[#allocation7 + $0x140] sm:$0xff]  ;;  %v626_v46 = vpack.c.bf16 %v243_v43, %v241_v42  ;;  %v247_v49 = vld [vmem:[#allocation7 + $0x138] sm:$0xff] }
  0x57   :  { %638 = vmatpush3.bf16.msra.mxu1 %v637_v33  ;;  %601 = vmatprep.mubr.msk.f32.mxu1 %vm884_vm1, %v883_v3  ;;  %v628_v47 = vpack.c.bf16 %v248_v45, %v246_v44  ;;  %v245_v48 = vld [vmem:[#allocation7 + $0x120] sm:$0xff]  ;;  %v250_v50 = vld [vmem:[#allocation7 + $0x158] sm:$0xff]  ;;  %v252_v51 = vld [vmem:[#allocation7 + $0x170] sm:$0xff] }
  0x58   :  { %639 = vmatprep.subr.bf16.mxu1 %v885_v37  ;;  %v630_v52 = vpack.c.bf16 %v247_v49, %v245_v48  ;;  %v632_v53 = vpack.c.bf16 %v252_v51, %v250_v50  ;;  %v249_v54 = vld [vmem:[#allocation7 + $0x150] sm:$0xff]  ;;  %v251_v55 = vld [vmem:[#allocation7 + $0x168] sm:$0xff]  ;;  %v341_v58 = vld [vmem:[#allocation7 + $0x40] sm:$0xff] }
  0x59   :  { %615 = vmatpush1.bf16.msra.mxu0 %v614_v23  ;;  %v634_v56 = vpack.c.bf16 %v251_v55, %v249_v54  ;;  %v71_v57 = vld [vmem:[#allocation2] sm:$0xff]  ;;  %v342_v59 = vld [vmem:[#allocation7 + $0x58] sm:$0xff]  ;;  %v344_v62 = vld [vmem:[#allocation7 + $0x88] sm:$0xff] }
  0x5a   :  { %617 = vmatprep.subr.bf16.mxu0 %v616_v24  ;;  %v640_v60 = vpack.c.bf16 %v342_v59, %v341_v58  ;;  %v343_v61 = vld [vmem:[#allocation7 + $0x70] sm:$0xff]  ;;  %v345_v0 = vld [vmem:[#allocation7 + $0xa0] sm:$0xff]  ;;  %v346_v1 = vld [vmem:[#allocation7 + $0xb8] sm:$0xff] }
  0x5b   :  { %v643_v63 = vpack.c.bf16 %v344_v62, %v343_v61  ;;  %v646_v2 = vpack.c.bf16 %v346_v1, %v345_v0  ;;  %v347_v3 = vld [vmem:[#allocation7 + $0xd0] sm:$0xff]  ;;  %v348_v4 = vld [vmem:[#allocation7 + $0xe8] sm:$0xff]  ;;  %v349_v6 = vld [vmem:[#allocation7 + $0x100] sm:$0xff] }
  0x5c   :  { %641 = vmatpush3.bf16.msra.mxu1 %v640_v60  ;;  %v649_v5 = vpack.c.bf16 %v348_v4, %v347_v3  ;;  %v350_v7 = vld [vmem:[#allocation7 + $0x118] sm:$0xff]  ;;  %v351_v9 = vld [vmem:[#allocation7 + $0x130] sm:$0xff]  ;;  %v352_v10 = vld [vmem:[#allocation7 + $0x148] sm:$0xff] }
  0x5d   :  { %619 = vmatpush1.bf16.msra.mxu0 %v618_v32  ;;  %642 = vmatprep.subr.bf16.mxu1 %v885_v37  ;;  %v652_v8 = vpack.c.bf16 %v350_v7, %v349_v6  ;;  %v655_v11 = vpack.c.bf16 %v352_v10, %v351_v9  ;;  %v353_v12 = vld [vmem:[#allocation7 + $0x160] sm:$0xff]  ;;  %v354_v13 = vld [vmem:[#allocation7 + $0x178] sm:$0xff] }
  0x5e   :  { %621 = vmatprep.subr.bf16.mxu0 %v620_v34  ;;  %v658_v14 = vpack.c.bf16 %v354_v13, %v353_v12 }
  0x60   :  { %644 = vmatpush3.bf16.msra.mxu1 %v643_v63 }
  0x61   :  { %623 = vmatpush1.bf16.msra.mxu0 %v622_v40  ;;  %645 = vmatprep.subr.bf16.mxu1 %v885_v37 }
  0x62   :  { %625 = vmatprep.subr.bf16.mxu0 %v624_v41 }
  0x64   :  { %647 = vmatpush3.bf16.msra.mxu1 %v646_v2 }
  0x65   :  { %627 = vmatpush1.bf16.msra.mxu0 %v626_v46  ;;  %648 = vmatprep.subr.bf16.mxu1 %v885_v37 }
  0x66   :  { %629 = vmatprep.subr.bf16.mxu0 %v628_v47 }
  0x68   :  { %650 = vmatpush3.bf16.msra.mxu1 %v649_v5 }
  0x69   :  { %631 = vmatpush1.bf16.msra.mxu0 %v630_v52  ;;  %651 = vmatprep.subr.bf16.mxu1 %v885_v37 }
  0x6a   :  { %633 = vmatprep.subr.bf16.mxu0 %v632_v53 }
  0x6c   :  { %653 = vmatpush3.bf16.msra.mxu1 %v652_v8 }
  0x6d   :  { %635 = vmatpush1.bf16.msra.mxu0 %v634_v56  ;;  %654 = vmatprep.subr.bf16.mxu1 %v885_v37 }
  0x70   :  { %318 = vmatmul.mubr.f32.vlgmr.msra.gmra.mrb[0].mxu0 %v71_v57  ;;  %656 = vmatpush3.bf16.msra.mxu1 %v655_v11 }
  0x71   :  { %657 = vmatprep.subr.bf16.mxu1 %v885_v37 }
  0x74   :  { %659 = vmatpush3.bf16.msra.mxu1 %v658_v14 }
 0x143   :  { %v319_v15 = vpop.f32.mrb[0].mxu0 }
 0x144   :  { %v537_v16 = vmul.f32 -1.442695, %v319_v15  ;;  %v321_v17 = vpop.f32.mrb[1].mxu0 }
 0x145   :  { %v538_v22 = vmul.f32 -1.442695, %v321_v17 }
 0x146   :  { %712 = vpow2.f32 %v537_v16 }
 0x150   :  { %v713_v18 = vpop.eup %712 }
 0x151   :  { %v328_v19 = vadd.f32 1.0, %v713_v18 }
 0x153   :  { %714 = vrcp.f32 %v328_v19 }
 0x154   :  { %716 = vpow2.f32 %v538_v22 }
 0x15d   :  { %v715_v20 = vpop.eup %714 }
 0x15e   :  { %v338_v21 = vmul.f32 %v715_v20, %v71_v57  ;;  %v717_v23 = vpop.eup %716 }
 0x15f   :  { %v335_v24 = vadd.f32 1.0, %v717_v23 }
 0x160   :  { %602 = vmatmul.mubr.f32.vlgmr.msra.gmra.mrb[0].mxu1 %v338_v21 }
 0x161   :  { %718 = vrcp.f32 %v335_v24 }
 0x16b   :  { %v719_v27 = vpop.eup %718 }
 0x16c   :  { %v428_v28 = vsub.f32 1.0, %v719_v27  ;;  %v427_v30 = vmul.f32 %v719_v27, %v71_v57 }
 0x233   :  { %v421_v25 = vpop.f32.mrb[0].mxu1 }
 0x234   :  { %720 = vtanh.f32 %v421_v25  ;;  %v603_v26 = vpop.f32.mrb[1].mxu1 }
 0x23e   :  { %v721_v29 = vpop.eup %720 }
 0x23f   :  { %v429_v31 = vmul.f32 %v721_v29, %v428_v28  ;;  %432 = vst [vmem:[#allocation3] sm:$0xff] %v721_v29 }
 0x241   :  { %v430_v32 = vadd.f32 %v429_v31, %v427_v30 }
 0x243   :  { %431 = vst [vmem:[#allocation2] sm:$0xff] %v430_v32 }
 0x244 LB: > { %p671_p13 = scmp.lt.s32.totalorder %s872_s4, 5  ;;  %s445_s20 = scalar_lea.vmem [#allocation2], %s872_s4  ;;  %s872_s4 = sphi %s991_s4, %s438_s4  }
 0x245   : > { %s456_s21 = sshll.u32 %s445_s20, 4  ;;  %s460_s22 = scalar_lea.vmem [#allocation3], %s872_s4  ;;  %s457_s21 = int_to_ptr.vmem [resolvable:$true] %s456_s21 }
 0x246   : > { %s665_s17 = scalar_select %p671_p13, [#allocation6], [#allocation17] }
 0x247   : > { %s666_s18 = scalar_select %p671_p13, %s872_s4, 0 }
 0x248   : > { %s470_s23 = sshll.u32 %s460_s22, 4  ;;  %s780_s29 = scalar_lea.vmem %s457_s21, 16  ;;  %s1004_s23 = int_to_ptr.vmem [resolvable:$true] %s470_s23 }
 0x249   : > { %s444_s19 = sld [smem:[%s665_s17 + %s666_s18]]  ;;  %p781_p0 = scmp.ne.s32.totalorder %s457_s21, %s780_s29 }
 0x24a   : > { %p787_p3 = scmp.lt.s32.totalorder %s457_s21, %s958_s0  ;;  %p788_p4 = scmp.lt.s32.totalorder %s772_s9, %s780_s29 }
 0x24b   : > { %p782_p1 = pnand %p781_p0, %p671_p13 }
 0x24c   : > { %p789_p5 = por %p788_p4, %p787_p3 }
 0x24d   : > { %p783_p2 = pneg %p782_p1 }
 0x24f   : > { %s540_s24 = sshll.u32 %s444_s19, 4  ;;  %p790_p6 = pnand %p789_p5, %p783_p2 }
 0x250   : > { %s447_s26 = scalar_lea.hbm %s1059_s6, %s540_s24  ;;  %s1012_s28 = scalar_lea.hbm %s1060_s7, %s540_s24 }
 0x251   : > { %793 = shalt.err (!%p790_p6)  }
 0x252   : > { %s794_s30 = scalar_lea.hbm %s447_s26, 16  ;;  %s798_s11 = scalar_lea.hbm %s1059_s6, 256 }
 0x253   : > { %p795_p7 = scmp.ne.s32.totalorder %s447_s26, %s794_s30  ;;  %p799_p10 = scmp.lt.u32.totalorder %s447_s26, %s1059_s6 }
 0x254   : > { %p800_p11 = scmp.lt.u32.totalorder %s798_s11, %s794_s30  ;;  %p802_p0 = scmp.lt.u32.totalorder %s794_s30, %s447_s26 }
 0x255   : > { %p796_p8 = pnand %p795_p7, %p671_p13 }
 0x256   : > { %p801_p12 = por %p800_p11, %p799_p10 }
 0x257   : > { %p797_p9 = pneg %p796_p8 }
 0x258   : > { %p803_p1 = por %p802_p0, %p801_p12 }
 0x25a   : > { %p804_p2 = pnand %p803_p1, %p797_p9 }
 0x25c   : > { %807 = shalt.err (!%p804_p2)  }
 0x25d   : > { %667 = dma.vmem_to_hbm [thread:$0]  (%p671_p13), %s457_s21, 16, %s447_s26, [#allocation4 + $0x1] }
 0x25e   : > { %s808_s14 = scalar_lea.vmem %s1004_s23, 16  ;;  %s886_s1 = smov [#allocation3]  }
 0x25f   : > { %p809_p3 = scmp.ne.s32.totalorder %s1004_s23, %s808_s14  ;;  %s812_s15 = sshll.u32 %s886_s1, 4  ;;  %s813_s15 = int_to_ptr.vmem [resolvable:$false] %s812_s15 }
 0x260   : > { %s814_s3 = scalar_lea.vmem %s813_s15, 128  ;;  %p815_p6 = scmp.lt.s32.totalorder %s1004_s23, %s813_s15 }
 0x261   : > { %p810_p4 = pnand %p809_p3, %p671_p13  ;;  %p816_p7 = scmp.lt.s32.totalorder %s814_s3, %s808_s14 }
 0x263   : > { %p811_p5 = pneg %p810_p4  ;;  %p817_p8 = por %p816_p7, %p815_p6 }
 0x265   : > { %p818_p9 = pnand %p817_p8, %p811_p5 }
 0x267   : > { %821 = shalt.err (!%p818_p9)  }
 0x268   : > { %s822_s16 = scalar_lea.hbm %s1012_s28, 16  ;;  %s826_s19 = scalar_lea.hbm %s1060_s7, 256 }
 0x269   : > { %p823_p10 = scmp.ne.s32.totalorder %s1012_s28, %s822_s16  ;;  %p827_p0 = scmp.lt.u32.totalorder %s1012_s28, %s1060_s7 }
 0x26a   : > { %p828_p1 = scmp.lt.u32.totalorder %s826_s19, %s822_s16  ;;  %p830_p3 = scmp.lt.u32.totalorder %s822_s16, %s1012_s28 }
 0x26b   : > { %p824_p11 = pnand %p823_p10, %p671_p13 }
 0x26c   : > { %p829_p2 = por %p828_p1, %p827_p0 }
 0x26d   : > { %p825_p12 = pneg %p824_p11 }
 0x26e   : > { %p831_p4 = por %p830_p3, %p829_p2 }
 0x270   : > { %p832_p5 = pnand %p831_p4, %p825_p12 }
 0x272   : > { %835 = shalt.err (!%p832_p5)  }
 0x273   : > { %668 = dma.vmem_to_hbm [thread:$0]  (%p671_p13), %s1004_s23, 16, %s1012_s28, [#allocation4 + $0x1] }
 0x274   : > { %s438_s4 = sadd.s32 1, %s872_s4  }
 0x275   : > { %p435_p6 = scmp.ge.s32.totalorder %s438_s4, 8  }
 0x276   :  { %s874_s22 = smov (%p435_p6), 0  }
 0x277   :  { %437 = sbr.rel (!%p435_p6) target bundleno = 580 (0x244), region = 107 }
 0x27e LB: > { %p672_p7 = scmp.lt.s32.totalorder %s876_s22, 5  ;;  %s876_s22 = sphi %s874_s22, %s479_s22  }
 0x280   : > { %859 = dma.done.wait (%p672_p7), [#allocation4 + $0x1], 32 }
 0x281   : > { %861 = vsyncadd (%p672_p7), [#allocation4 + $0x1], 4294967264  ;;  %s479_s22 = sadd.s32 1, %s876_s22  }
 0x282   : > { %p476_p8 = scmp.ge.s32.totalorder %s479_s22, 8  }
 0x284   :  { %478 = sbr.rel (!%p476_p8) target bundleno = 638 (0x27e), region = 118 }
 0x28b   :  { %491 = vsyncpa [#allocation8], 1 }
 0x28c   :  { %492 = vsyncmov [#allocation4] }
 0x28f   :  { %s493_s23 = vpop.sfrf %492 }
 0x290   :  { %p543_p13 = scmp.ne.s32.totalorder %s493_s23, 0 }
 0x292   :  { %497 = shalt.err (%p543_p13)  }
 0x293   :  { %499 = vsyncmov [#allocation4 + $0x1] }
 0x296   :  { %s500_s24 = vpop.sfrf %499 }
 0x297   :  { %p544_p9 = scmp.ne.s32.totalorder %s500_s24, 0 }
 0x299   :  { %504 = shalt.err (%p544_p9)  }

</bundles_post_ra>
